<compile_context>
chip_gen: v7x
topology: tpu7x:2x2x1
jax: 0.10.0
libtpu: 0.0.40
codegen_flags: <defaults>
</compile_context>

<pallas_src>
import jax
import jax.numpy as jnp
from jax import lax
from jax.experimental import pallas as pl
from jax.experimental.pallas import tpu as pltpu

BN_EPS = 1e-5
LANE = 128
VMEM_LIMIT_BYTES = 32 * 1024 * 1024   # safe on v5e/v6e (128 MiB) and v7x (64 MiB)
VMEM_BUDGET_BYTES = 24 * 1024 * 1024  # leave headroom below the scoped limit


def _round_up(x, m):
    return (x + m - 1) // m * m


def _largest_divisor(m, cap, step):
    best = 0
    d = step
    while d <= min(m, cap):
        if m % d == 0:
            best = d
        d += step
    return best


def _pick_row_tile(m, bytes_per_row, cap_rows=1024):
    """Largest divisor of m (multiple of 16, fallback 8) within the VMEM budget."""
    cap = max(16, VMEM_BUDGET_BYTES // max(bytes_per_row, 1))
    cap = min(cap, cap_rows)
    tm = _largest_divisor(m, cap, 16) or _largest_divisor(m, cap, 8)
    return tm


def _conv_pool_relu_kernel(p_ref, w_ref, b_ref, r_ref, sum_ref, ssq_ref):
    """Fused conv (one matmul over all 4 pool quadrants) -> maxpool -> ReLU.

    p_ref:   (4, TM, K)   im2col patches, one slab per 2x2 pool quadrant
    w_ref:   (K, Cp)      conv weight (index-invariant -> VMEM resident)
    b_ref:   (1, Cp)      conv bias (f32)
    r_ref:   (TM, Cp)     pooled + ReLU'd activations (f32)
    sum_ref: (1, 1, Cp)   per-tile per-channel sum of r (f32)
    ssq_ref: (1, 1, Cp)   per-tile per-channel sum of r*r (f32)
    """
    tm = p_ref.shape[1]
    k = p_ref.shape[2]
    # One long matmul keeps the MXU on a single push/drain cadence instead of
    # four short ones (and reduces live vreg pressure).
    p = p_ref[...].reshape(4 * tm, k)
    c = jnp.dot(p, w_ref[...], preferred_element_type=jnp.float32)
    c = c.reshape(4, tm, c.shape[-1])
    # MaxPool2d(2, 2): max over the four quadrants of each 2x2 window.
    pooled = jnp.maximum(jnp.maximum(c[0], c[1]), jnp.maximum(c[2], c[3]))
    # Bias is per-channel, so adding it once after the max is equivalent.
    r = jnp.maximum(pooled + b_ref[...], 0.0)
    r_ref[...] = r
    # Per-tile BN partials (keeps the grid axis fully parallel; combined later).
    sum_ref[...] = jnp.sum(r, axis=0, keepdims=True).reshape(1, 1, -1)
    ssq_ref[...] = jnp.sum(r * r, axis=0, keepdims=True).reshape(1, 1, -1)


def _bn_normalize_kernel(r_ref, scale_ref, shift_ref, o_ref):
    # y = (r - mean) * rstd  ==  r * scale + shift  with scale=rstd, shift=-mean*rstd
    o_ref[...] = r_ref[...] * scale_ref[...] + shift_ref[...]


def down_pallas(x_nchw, conv_w, conv_b, *, mxu_dtype=jnp.bfloat16):
    """Down.forward.  x_nchw: (N, Cin, H, W); conv_w: (Cout, Cin, 3, 3); conv_b: (Cout,)."""
    N, Cin, H, W = x_nchw.shape
    Cout = conv_w.shape[0]
    assert H % 2 == 0 and W % 2 == 0
    Hp, Wp = H // 2, W // 2
    M = N * Hp * Wp
    K = 9 * Cin
    Cp = _round_up(Cout, LANE)           # lane-dense output / MXU width
    itemsize = jnp.dtype(mxu_dtype).itemsize

    # Pass-1 row tile: dominant VMEM consumers per row are the double-buffered
    # patches block (4*K*itemsize) and the f32 activation block (Cp*4).
    bytes_per_row_1 = 2 * (4 * K * itemsize) + 2 * (Cp * 4)
    TM = _pick_row_tile(M, bytes_per_row_1)
    assert TM > 0, "N*Hp*Wp must be a multiple of 8"
    num_tiles = M // TM

    # Pass-2 row tile (pure elementwise; biggest tile that fits is fastest).
    bytes_per_row_2 = 4 * (Cp * 4)       # double-buffered in + out, both f32
    TM2 = _pick_row_tile(M, bytes_per_row_2, cap_rows=2048)
    num_tiles2 = M // TM2

    # ---- glue (plain JAX): NCHW -> NHWC, pad, im2col grouped by pool quadrant.
    x = jnp.transpose(x_nchw, (0, 2, 3, 1))                  # (N, H, W, Cin)
    xpad = jnp.pad(x, ((0, 0), (1, 1), (1, 1), (0, 0)))      # (N, H+2, W+2, Cin)
    taps = [xpad[:, kh:kh + H, kw:kw + W, :]                 # each (N, H, W, Cin)
            for kh in range(3) for kw in range(3)]
    patches = jnp.stack(taps, axis=3).reshape(N, H, W, K)    # tap order (kh, kw, ci)
    quads = [patches[:, dh::2, dw::2, :].reshape(M, K)
             for dh in range(2) for dw in range(2)]
    patches_q = jnp.stack(quads, axis=0).astype(mxu_dtype)   # (4, M, K)

    # Conv weight -> lane-padded matmul operand with matching (kh, kw, ci) order.
    w2d = jnp.transpose(conv_w, (2, 3, 1, 0)).reshape(K, Cout)
    w2d = jnp.pad(w2d, ((0, 0), (0, Cp - Cout))).astype(mxu_dtype)       # (K, Cp)
    b2d = jnp.pad(conv_b, (0, Cp - Cout)).reshape(1, Cp).astype(jnp.float32)

    # ---- pass 1: conv + maxpool + relu, with per-tile BN partial sums.
    r, psum, pssq = pl.pallas_call(
        _conv_pool_relu_kernel,
        out_shape=(
            jax.ShapeDtypeStruct((M, Cp), jnp.float32),
            jax.ShapeDtypeStruct((num_tiles, 1, Cp), jnp.float32),
            jax.ShapeDtypeStruct((num_tiles, 1, Cp), jnp.float32),
        ),
        grid_spec=pltpu.PrefetchScalarGridSpec(
            num_scalar_prefetch=0,
            grid=(num_tiles,),
            in_specs=[
                pl.BlockSpec((4, TM, K), lambda i: (0, i, 0)),
                pl.BlockSpec((K, Cp), lambda i: (0, 0)),      # weight stays resident
                pl.BlockSpec((1, Cp), lambda i: (0, 0)),      # bias stays resident
            ],
            out_specs=[
                pl.BlockSpec((TM, Cp), lambda i: (i, 0)),
                pl.BlockSpec((1, 1, Cp), lambda i: (i, 0, 0)),
                pl.BlockSpec((1, 1, Cp), lambda i: (i, 0, 0)),
            ],
        ),
        compiler_params=pltpu.CompilerParams(
            dimension_semantics=("parallel",),                # shards across v7x TCs
            vmem_limit_bytes=VMEM_LIMIT_BYTES),
    )(patches_q, w2d, b2d)

    # ---- tiny cross-tile combine for training-mode BN (all f32).
    total = jnp.sum(psum, axis=(0, 1))                        # (Cp,)
    total_sq = jnp.sum(pssq, axis=(0, 1))                     # (Cp,)
    mean = total / M
    var = jnp.maximum(total_sq / M - mean * mean, 0.0)        # biased variance
    rstd = lax.rsqrt(var + BN_EPS)
    scale = rstd.reshape(1, Cp)
    shift = (-mean * rstd).reshape(1, Cp)

    # ---- pass 2: lane-dense normalize sweep, writing in place over r's buffer.
    y = pl.pallas_call(
        _bn_normalize_kernel,
        out_shape=jax.ShapeDtypeStruct((M, Cp), jnp.float32),
        grid_spec=pltpu.PrefetchScalarGridSpec(
            num_scalar_prefetch=0,
            grid=(num_tiles2,),
            in_specs=[
                pl.BlockSpec((TM2, Cp), lambda i: (i, 0)),
                pl.BlockSpec((1, Cp), lambda i: (0, 0)),
                pl.BlockSpec((1, Cp), lambda i: (0, 0)),
            ],
            out_specs=pl.BlockSpec((TM2, Cp), lambda i: (i, 0)),
        ),
        input_output_aliases={0: 0},      # reuse r's HBM buffer for the output
        compiler_params=pltpu.CompilerParams(
            dimension_semantics=("parallel",),
            vmem_limit_bytes=VMEM_LIMIT_BYTES),
    )(r, scale, shift)

    # rows are ordered (n, ph, pw); drop channel padding and go back to NCHW.
    y = y[:, :Cout].reshape(N, Hp, Wp, Cout)
    return jnp.transpose(y, (0, 3, 1, 2))


def down_reference(x_nchw, conv_w, conv_b):
    """Pure-JAX (f32) reference of the PyTorch Down.forward (training-mode BN)."""
    conv = lax.conv_general_dilated(
        x_nchw, conv_w, window_strides=(1, 1), padding=((1, 1), (1, 1)),
        dimension_numbers=("NCHW", "OIHW", "NCHW")) + conv_b.reshape(1, -1, 1, 1)
    pooled = lax.reduce_window(conv, -jnp.inf, lax.max,
                               (1, 1, 2, 2), (1, 1, 2, 2), "VALID")
    r = jnp.maximum(pooled, 0.0)
    mean = jnp.mean(r, axis=(0, 2, 3), keepdims=True)
    var = jnp.mean((r - mean) ** 2, axis=(0, 2, 3), keepdims=True)
    return (r - mean) / jnp.sqrt(var + BN_EPS)


if __name__ == "__main__":
    N, Cin, Cout, H, W = 2, 4, 8, 16, 16

    key = jax.random.PRNGKey(0)
    kx, kw, kb = jax.random.split(key, 3)
    x = jax.random.normal(kx, (N, Cin, H, W), dtype=jnp.float32)
    conv_w = jax.random.normal(kw, (Cout, Cin, 3, 3), dtype=jnp.float32) * 0.1
    conv_b = jax.random.normal(kb, (Cout,), dtype=jnp.float32) * 0.1

    out = jax.block_until_ready(down_pallas(x, conv_w, conv_b))
    ref = jax.block_until_ready(down_reference(x, conv_w, conv_b))

    assert out.shape == (N, Cout, H // 2, W // 2)
    # Default path feeds the MXU bf16 inputs (f32 accumulation / f32 BN), so
    # compare to the pure-f32 reference with a matching tolerance;
    # mxu_dtype=jnp.float32 reproduces the reference to <1e-4.
    assert jnp.allclose(out, ref, atol=5e-2, rtol=5e-2), float(
        jnp.max(jnp.abs(out - ref)))
    print("KERNEL_OK")
</pallas_src>

<mosaic_0001>
module attributes {stable_mosaic.version = 11 : i64} {
  func.func @_conv_pool_relu_kernel(%arg0: i32, %arg1: memref<4x128x36xbf16, #tpu.memory_space<vmem>>, %arg2: memref<36x128xbf16, #tpu.memory_space<vmem>>, %arg3: memref<1x128xf32, #tpu.memory_space<vmem>>, %arg4: memref<128x128xf32, #tpu.memory_space<vmem>>, %arg5: memref<1x1x128xf32, #tpu.memory_space<vmem>>, %arg6: memref<1x1x128xf32, #tpu.memory_space<vmem>>) attributes {dimension_semantics = [#tpu.dimension_semantics<parallel>], iteration_bounds = array<i64: 1>, scalar_prefetch = 0 : i64, scratch_operands = 0 : i64, tpu.core_type = #tpu.core_type<tc>, window_params = [{transform_indices = @transform_0, window_bounds = array<i64: 4, 128, 36>}, {pipeline_mode = #tpu.pipeline_mode<synchronous>, transform_indices = @transform_1, window_bounds = array<i64: 36, 128>}, {pipeline_mode = #tpu.pipeline_mode<synchronous>, transform_indices = @transform_2, window_bounds = array<i64: 1, 128>}, {transform_indices = @transform_3, window_bounds = array<i64: 128, 128>}, {transform_indices = @transform_4, window_bounds = array<i64: 1, 1, 128>}, {transform_indices = @transform_5, window_bounds = array<i64: 1, 1, 128>}]} {
    %c0 = arith.constant 0 : index
    %c0_0 = arith.constant 0 : index
    %c0_1 = arith.constant 0 : index
    %0 = vector.load %arg1[%c0, %c0_0, %c0_1] : memref<4x128x36xbf16, #tpu.memory_space<vmem>>, vector<4x128x36xbf16>
    %1 = vector.shape_cast %0 : vector<4x128x36xbf16> to vector<512x36xbf16>
    %c0_2 = arith.constant 0 : index
    %c0_3 = arith.constant 0 : index
    %2 = vector.load %arg2[%c0_2, %c0_3] : memref<36x128xbf16, #tpu.memory_space<vmem>>, vector<36x128xbf16>
    %cst = arith.constant dense<0.000000e+00> : vector<512x128xf32>
    %3 = tpu.matmul %1, %2, %cst {dimension_numbers = #tpu.dot_dimension_numbers<[1], [0], [0], [1], [0, 0, 1, 1], [], []>} : vector<512x36xbf16>, vector<36x128xbf16>, vector<512x128xf32> -> vector<512x128xf32>
    %4 = vector.shape_cast %3 : vector<512x128xf32> to vector<4x128x128xf32>
    %5 = vector.extract_strided_slice %4 {offsets = [0, 0, 0], sizes = [1, 128, 128], strides = [1, 1, 1]} : vector<4x128x128xf32> to vector<1x128x128xf32>
    %6 = vector.shape_cast %5 : vector<1x128x128xf32> to vector<128x128xf32>
    %7 = vector.extract_strided_slice %4 {offsets = [1, 0, 0], sizes = [1, 128, 128], strides = [1, 1, 1]} : vector<4x128x128xf32> to vector<1x128x128xf32>
    %8 = vector.shape_cast %7 : vector<1x128x128xf32> to vector<128x128xf32>
    %9 = arith.maximumf %6, %8 : vector<128x128xf32>
    %10 = vector.extract_strided_slice %4 {offsets = [2, 0, 0], sizes = [1, 128, 128], strides = [1, 1, 1]} : vector<4x128x128xf32> to vector<1x128x128xf32>
    %11 = vector.shape_cast %10 : vector<1x128x128xf32> to vector<128x128xf32>
    %12 = vector.extract_strided_slice %4 {offsets = [3, 0, 0], sizes = [1, 128, 128], strides = [1, 1, 1]} : vector<4x128x128xf32> to vector<1x128x128xf32>
    %13 = vector.shape_cast %12 : vector<1x128x128xf32> to vector<128x128xf32>
    %14 = arith.maximumf %11, %13 : vector<128x128xf32>
    %15 = arith.maximumf %9, %14 : vector<128x128xf32>
    %c0_4 = arith.constant 0 : index
    %c0_5 = arith.constant 0 : index
    %16 = vector.load %arg3[%c0_4, %c0_5] : memref<1x128xf32, #tpu.memory_space<vmem>>, vector<1x128xf32>
    %17 = vector.broadcast %16 : vector<1x128xf32> to vector<128x128xf32>
    %18 = arith.addf %15, %17 : vector<128x128xf32>
    %cst_6 = arith.constant 0.000000e+00 : f32
    %19 = vector.broadcast %cst_6 : f32 to vector<128x128xf32>
    %20 = arith.maximumf %18, %19 : vector<128x128xf32>
    %c0_7 = arith.constant 0 : index
    %c0_8 = arith.constant 0 : index
    %21 = vector.load %arg4[%c0_7, %c0_8] : memref<128x128xf32, #tpu.memory_space<vmem>>, vector<128x128xf32>
    tpu.vector_store %arg4[%c0_7, %c0_8], %20 {strides = array<i32>} : memref<128x128xf32, #tpu.memory_space<vmem>>, vector<128x128xf32>,
    %cst_9 = arith.constant dense<0.000000e+00> : vector<128xf32>
    %22 = vector.multi_reduction <add>, %20, %cst_9 [0] : vector<128x128xf32> to vector<128xf32>
    %23 = vector.shape_cast %22 : vector<128xf32> to vector<1x128xf32>
    %24 = vector.shape_cast %23 : vector<1x128xf32> to vector<1x1x128xf32>
    %c0_10 = arith.constant 0 : index
    %c0_11 = arith.constant 0 : index
    %c0_12 = arith.constant 0 : index
    %25 = vector.load %arg5[%c0_10, %c0_11, %c0_12] : memref<1x1x128xf32, #tpu.memory_space<vmem>>, vector<1x1x128xf32>
    tpu.vector_store %arg5[%c0_10, %c0_11, %c0_12], %24 {strides = array<i32>} : memref<1x1x128xf32, #tpu.memory_space<vmem>>, vector<1x1x128xf32>,
    %26 = arith.mulf %20, %20 : vector<128x128xf32>
    %cst_13 = arith.constant dense<0.000000e+00> : vector<128xf32>
    %27 = vector.multi_reduction <add>, %26, %cst_13 [0] : vector<128x128xf32> to vector<128xf32>
    %28 = vector.shape_cast %27 : vector<128xf32> to vector<1x128xf32>
    %29 = vector.shape_cast %28 : vector<1x128xf32> to vector<1x1x128xf32>
    %c0_14 = arith.constant 0 : index
    %c0_15 = arith.constant 0 : index
    %c0_16 = arith.constant 0 : index
    %30 = vector.load %arg6[%c0_14, %c0_15, %c0_16] : memref<1x1x128xf32, #tpu.memory_space<vmem>>, vector<1x1x128xf32>
    tpu.vector_store %arg6[%c0_14, %c0_15, %c0_16], %29 {strides = array<i32>} : memref<1x1x128xf32, #tpu.memory_space<vmem>>, vector<1x1x128xf32>,
    return
  }
  func.func @transform_0(%arg0: i32) -> (i32, i32, i32) {
    %c0_i32 = arith.constant 0 : i32
    %c0_i32_0 = arith.constant 0 : i32
    %c0_i32_1 = arith.constant 0 : i32
    return %c0_i32, %arg0, %c0_i32_0 : i32, i32, i32
  }
  func.func @transform_1(%arg0: i32) -> (i32, i32) {
    %c0_i32 = arith.constant 0 : i32
    %c0_i32_0 = arith.constant 0 : i32
    %c0_i32_1 = arith.constant 0 : i32
    return %c0_i32, %c0_i32_0 : i32, i32
  }
  func.func @transform_2(%arg0: i32) -> (i32, i32) {
    %c0_i32 = arith.constant 0 : i32
    %c0_i32_0 = arith.constant 0 : i32
    %c0_i32_1 = arith.constant 0 : i32
    return %c0_i32, %c0_i32_0 : i32, i32
  }
  func.func @transform_3(%arg0: i32) -> (i32, i32) {
    %c0_i32 = arith.constant 0 : i32
    %c0_i32_0 = arith.constant 0 : i32
    return %arg0, %c0_i32 : i32, i32
  }
  func.func @transform_4(%arg0: i32) -> (i32, i32, i32) {
    %c0_i32 = arith.constant 0 : i32
    %c0_i32_0 = arith.constant 0 : i32
    %c0_i32_1 = arith.constant 0 : i32
    return %arg0, %c0_i32, %c0_i32_0 : i32, i32, i32
  }
  func.func @transform_5(%arg0: i32) -> (i32, i32, i32) {
    %c0_i32 = arith.constant 0 : i32
    %c0_i32_0 = arith.constant 0 : i32
    %c0_i32_1 = arith.constant 0 : i32
    return %arg0, %c0_i32, %c0_i32_0 : i32, i32, i32
  }
}

</mosaic_0001>

<bundles_post_ra>
// kernel: tpu_custom_call.1
= control target key start
LH: loop header
LB: loop body
LE: loop exit
PB: predicated region body
PF: predicated region fallthrough
CT: control target
= control target key end

     0   :  { %11 = vsyncpa [#allocation3], 0  ;;  %vm264_vm0 = vcmask 293888   ;;  %vm361_vm1 = vcmask 1041408   ;;  %s1460_s0 = inlined_call_operand.vmem [shape: bf16[4,128,36], index: 0, kind: input, shape index: {}]   ;;  %s1461_s1 = inlined_call_operand.vmem [shape: bf16[36,128], index: 1, kind: input, shape index: {}]   ;;  %s1462_s2 = inlined_call_operand.vmem [shape: f32[1,128], index: 2, kind: input, shape index: {}]   ;;  %s1463_s3 = inlined_call_operand.hbm [shape: f32[128,128], index: 3, kind: output, shape index: {0}]   ;;  %s1464_s4 = inlined_call_operand.hbm [shape: f32[1,1,128], index: 4, kind: output, shape index: {1}]   ;;  %s1465_s5 = inlined_call_operand.hbm [shape: f32[1,1,128], index: 5, kind: output, shape index: {2}]  }
   0x1   :  { %v1046_v0 = vld [vmem:[%s1461_s1] sm:$0xff]   ;;  %v1047_v1 = vld [vmem:[%s1461_s1 + $0x8] sm:$0xff]   ;;  %v1048_v2 = vld [vmem:[%s1461_s1 + $0x10] ss:$0 sps:$4 sm:$0x33]  }
   0x2   :  { %963 = vmatprep.subr.bf16.mxu0 %v1046_v0  ;;  %1033 = vmatprep.subr.bf16.mxu1 %v1046_v0  ;;  %v1049_v3 = vld [vmem:[%s1460_s0] sm:$0xff]   ;;  %v363_v5 = vsel %vm361_vm1, %v1048_v2, 0  ;;  %v1051_v6 = vld [vmem:[%s1460_s0 + $0x8] sm:$0xff]   ;;  %v1053_v8 = vld [vmem:[%s1460_s0 + $0x10] sm:$0xff]  }
   0x3   :  { %964 = vmatpush3.bf16.msra.mxu0 %v1046_v0  ;;  %1036 = vmatpush3.bf16.msra.mxu1 %v1046_v0  ;;  %v1050_v4 = vld [vmem:[%s1460_s0 + $0x80] sm:$0xff]   ;;  %v1052_v7 = vld [vmem:[%s1460_s0 + $0x88] sm:$0xff]   ;;  %v1054_v9 = vld [vmem:[%s1460_s0 + $0x90] sm:$0xff]  }
   0x4   :  { %965 = vmatprep.subr.bf16.mxu0 %v1047_v1  ;;  %1034 = vmatprep.subr.bf16.mxu1 %v1047_v1  ;;  %v1055_v10 = vld [vmem:[%s1460_s0 + $0x18] sm:$0xff]   ;;  %v1057_v12 = vld [vmem:[%s1460_s0 + $0x20] sm:$0xff]   ;;  %v1059_v14 = vld [vmem:[%s1460_s0 + $0x28] sm:$0xff]  }
   0x5   :  { %969 = vmatprep.mubr.msk.bf16.mxu0 %vm264_vm0, %v1049_v3  ;;  %1001 = vmatprep.mubr.msk.bf16.mxu1 %vm264_vm0, %v1050_v4  ;;  %v1056_v11 = vld [vmem:[%s1460_s0 + $0x98] sm:$0xff]   ;;  %v1058_v13 = vld [vmem:[%s1460_s0 + $0xa0] sm:$0xff]   ;;  %v1060_v15 = vld [vmem:[%s1460_s0 + $0xa8] sm:$0xff]  }
   0x6   :  { %v1061_v16 = vld [vmem:[%s1460_s0 + $0x30] sm:$0xff]   ;;  %v1063_v18 = vld [vmem:[%s1460_s0 + $0x38] sm:$0xff]  }
   0x7   :  { %966 = vmatpush3.bf16.msra.mxu0 %v1047_v1  ;;  %1037 = vmatpush3.bf16.msra.mxu1 %v1047_v1  ;;  %v1062_v17 = vld [vmem:[%s1460_s0 + $0xb0] sm:$0xff]   ;;  %v1064_v19 = vld [vmem:[%s1460_s0 + $0xb8] sm:$0xff]  }
   0x8   :  { %1039 = vmatprep.subr.msk.bf16.mxu0 %vm361_vm1, %v1048_v2  ;;  %1040 = vmatprep.subr.msk.bf16.mxu1 %vm361_vm1, %v1048_v2 }
   0xb   :  { %968 = vmatpush3.bf16.msra.mxu0 %v363_v5  ;;  %1038 = vmatpush3.bf16.msra.mxu1 %v363_v5 }
   0xe   :  { %970 = vmatmul.mubr.msk.bf16.vlgmr.msra.gmra.mrb[0].mxu0 %vm264_vm0, %v1051_v6  ;;  %1002 = vmatmul.mubr.msk.bf16.vlgmr.msra.gmra.mrb[0].mxu1 %vm264_vm0, %v1052_v7 }
   0xf   :  { %973 = vmatprep.mubr.msk.bf16.mxu0 %vm264_vm0, %v1053_v8  ;;  %1005 = vmatprep.mubr.msk.bf16.mxu1 %vm264_vm0, %v1054_v9 }
  0x16   :  { %974 = vmatmul.mubr.msk.bf16.gmra.mrb[4].mxu0 %vm264_vm0, %v1055_v10  ;;  %1006 = vmatmul.mubr.msk.bf16.gmra.mrb[4].mxu1 %vm264_vm0, %v1056_v11 }
  0x17   :  { %977 = vmatprep.mubr.msk.bf16.mxu0 %vm264_vm0, %v1057_v12  ;;  %1009 = vmatprep.mubr.msk.bf16.mxu1 %vm264_vm0, %v1058_v13 }
  0x1e   :  { %978 = vmatmul.mubr.msk.bf16.gmra.mrb[8].mxu0 %vm264_vm0, %v1059_v14  ;;  %1010 = vmatmul.mubr.msk.bf16.gmra.mrb[8].mxu1 %vm264_vm0, %v1060_v15 }
  0x1f   :  { %981 = vmatprep.mubr.msk.bf16.mxu0 %vm264_vm0, %v1061_v16  ;;  %1013 = vmatprep.mubr.msk.bf16.mxu1 %vm264_vm0, %v1062_v17 }
  0x20   :  { %12 = vsyncpa [#allocation5], 0  ;;  %v1065_v20 = vld [vmem:[%s1460_s0 + $0x40] sm:$0xff]   ;;  %v1067_v22 = vld [vmem:[%s1460_s0 + $0x48] sm:$0xff]  }
  0x21   :  { %v1066_v21 = vld [vmem:[%s1460_s0 + $0xc0] sm:$0xff]   ;;  %v1068_v23 = vld [vmem:[%s1460_s0 + $0xc8] sm:$0xff]   ;;  %v1069_v24 = vld [vmem:[%s1460_s0 + $0x50] sm:$0xff]  }
  0x22   :  { %v1070_v25 = vld [vmem:[%s1460_s0 + $0xd0] sm:$0xff]   ;;  %v1071_v26 = vld [vmem:[%s1460_s0 + $0x58] sm:$0xff]   ;;  %v1073_v28 = vld [vmem:[%s1460_s0 + $0x60] sm:$0xff]  }
  0x23   :  { %v1072_v27 = vld [vmem:[%s1460_s0 + $0xd8] sm:$0xff]   ;;  %v1074_v29 = vld [vmem:[%s1460_s0 + $0xe0] sm:$0xff]   ;;  %v1075_v30 = vld [vmem:[%s1460_s0 + $0x68] sm:$0xff]  }
  0x24   :  { %v1076_v31 = vld [vmem:[%s1460_s0 + $0xe8] sm:$0xff]   ;;  %v1077_v32 = vld [vmem:[%s1460_s0 + $0x70] sm:$0xff]   ;;  %v1079_v34 = vld [vmem:[%s1460_s0 + $0x78] sm:$0xff]  }
  0x25   :  { %v1078_v33 = vld [vmem:[%s1460_s0 + $0xf0] sm:$0xff]   ;;  %v1080_v35 = vld [vmem:[%s1460_s0 + $0xf8] sm:$0xff]   ;;  %v1374_v10 = vld [vmem:[%s1462_s2] ss:$0 sm:$0xff]  ;;  %s1151_s2 = smov [#allocation2]  }
  0x26   :  { %982 = vmatmul.mubr.msk.bf16.gmra.mrb[12].mxu0 %vm264_vm0, %v1063_v18  ;;  %1014 = vmatmul.mubr.msk.bf16.gmra.mrb[12].mxu1 %vm264_vm0, %v1064_v19  ;;  %s822_s11 = sshll.u32 %s1151_s2, 4  ;;  %s823_s11 = int_to_ptr.vmem [resolvable:$true] %s822_s11 }
  0x27   :  { %985 = vmatprep.mubr.msk.bf16.mxu0 %vm264_vm0, %v1065_v20  ;;  %1017 = vmatprep.mubr.msk.bf16.mxu1 %vm264_vm0, %v1066_v21  ;;  %s1081_s12 = scalar_lea.vmem %s823_s11, 2048  ;;  %p1086_p1 = scmp.lt.s32.totalorder %s823_s11, %s823_s11 }
  0x28   :  { %p1082_p0 = scmp.ne.s32.totalorder %s823_s11, %s1081_s12  ;;  %p1087_p2 = scmp.lt.s32.totalorder %s1081_s12, %s1081_s12 }
  0x2a   :  { %p1088_p3 = por %p1087_p2, %p1086_p1 }
  0x2c   :  { %p1089_p4 = pnand %p1088_p3, %p1082_p0 }
  0x2e   :  { %986 = vmatmul.mubr.msk.bf16.gmra.mrb[16].mxu0 %vm264_vm0, %v1067_v22  ;;  %1018 = vmatmul.mubr.msk.bf16.gmra.mrb[16].mxu1 %vm264_vm0, %v1068_v23 }
  0x2f   :  { %989 = vmatprep.mubr.msk.bf16.mxu0 %vm264_vm0, %v1069_v24  ;;  %1021 = vmatprep.mubr.msk.bf16.mxu1 %vm264_vm0, %v1070_v25 }
  0x36   :  { %990 = vmatmul.mubr.msk.bf16.gmra.mrb[20].mxu0 %vm264_vm0, %v1071_v26  ;;  %1022 = vmatmul.mubr.msk.bf16.gmra.mrb[20].mxu1 %vm264_vm0, %v1072_v27 }
  0x37   :  { %993 = vmatprep.mubr.msk.bf16.mxu0 %vm264_vm0, %v1073_v28  ;;  %1025 = vmatprep.mubr.msk.bf16.mxu1 %vm264_vm0, %v1074_v29 }
  0x3e   :  { %994 = vmatmul.mubr.msk.bf16.gmra.mrb[24].mxu0 %vm264_vm0, %v1075_v30  ;;  %1026 = vmatmul.mubr.msk.bf16.gmra.mrb[24].mxu1 %vm264_vm0, %v1076_v31 }
  0x3f   :  { %997 = vmatprep.mubr.msk.bf16.mxu0 %vm264_vm0, %v1077_v32  ;;  %1029 = vmatprep.mubr.msk.bf16.mxu1 %vm264_vm0, %v1078_v33 }
  0x46   :  { %998 = vmatmul.mubr.msk.bf16.gmra.mrb[28].mxu0 %vm264_vm0, %v1079_v34  ;;  %1030 = vmatmul.mubr.msk.bf16.gmra.mrb[28].mxu1 %vm264_vm0, %v1080_v35 }
  0xe1   :  { %v971_v36 = vpop.f32.mrb[0].mxu0  ;;  %v1003_v37 = vpop.f32.mrb[0].mxu1 }
  0xe2   :  { %v399_v38 = vpop.f32.mrb[1].mxu0  ;;  %v527_v39 = vpop.f32.mrb[1].mxu1 }
  0xe3   :  { %v972_v40 = vpop.f32.mrb[2].mxu0  ;;  %v1004_v41 = vpop.f32.mrb[2].mxu1 }
  0xe4   :  { %v402_v42 = vpop.f32.mrb[3].mxu0  ;;  %v530_v43 = vpop.f32.mrb[3].mxu1 }
  0xe9   :  { %v1323_v44 = vpop.f32.mrb[4].mxu0  ;;  %v1325_v45 = vpop.f32.mrb[4].mxu1 }
  0xea   :  { %v1327_v46 = vpop.f32.mrb[5].mxu0  ;;  %v1329_v47 = vpop.f32.mrb[5].mxu1 }
  0xeb   :  { %v1331_v48 = vpop.f32.mrb[6].mxu0  ;;  %v1333_v49 = vpop.f32.mrb[6].mxu1 }
  0xec   :  { %v1335_v50 = vpop.f32.mrb[7].mxu0  ;;  %v1337_v51 = vpop.f32.mrb[7].mxu1 }
  0xf1   :  { %v1339_v52 = vpop.f32.mrb[8].mxu0  ;;  %v1341_v53 = vpop.f32.mrb[8].mxu1 }
  0xf2   :  { %v1343_v54 = vpop.f32.mrb[9].mxu0  ;;  %v1345_v55 = vpop.f32.mrb[9].mxu1 }
  0xf3   :  { %v1347_v56 = vpop.f32.mrb[10].mxu0  ;;  %v1349_v57 = vpop.f32.mrb[10].mxu1 }
  0xf4   :  { %v1351_v58 = vpop.f32.mrb[11].mxu0  ;;  %v1353_v59 = vpop.f32.mrb[11].mxu1 }
  0xf9   :  { %v1355_v60 = vpop.f32.mrb[12].mxu0  ;;  %v1357_v61 = vpop.f32.mrb[12].mxu1 }
  0xfa   :  { %v1359_v62 = vpop.f32.mrb[13].mxu0  ;;  %v1361_v63 = vpop.f32.mrb[13].mxu1 }
  0xfb   :  { %v1363_v0 = vpop.f32.mrb[14].mxu0  ;;  %v1365_v1 = vpop.f32.mrb[14].mxu1 }
  0xfc   :  { %v1367_v2 = vpop.f32.mrb[15].mxu0  ;;  %v1369_v3 = vpop.f32.mrb[15].mxu1 }
 0x101   :  { %v987_v4 = vpop.f32.mrb[16].mxu0  ;;  %v1019_v5 = vpop.f32.mrb[16].mxu1 }
 0x102   :  { %v656_v6 = vmax.f32 %v971_v36, %v987_v4  ;;  %v672_v7 = vmax.f32 %v1003_v37, %v1019_v5  ;;  %v463_v8 = vpop.f32.mrb[17].mxu0  ;;  %v591_v9 = vpop.f32.mrb[17].mxu1 }
 0x103   :  { %v654_v11 = vmax.f32 %v399_v38, %v463_v8  ;;  %v670_v12 = vmax.f32 %v527_v39, %v591_v9  ;;  %v988_v13 = vpop.f32.mrb[18].mxu0  ;;  %v1020_v14 = vpop.f32.mrb[18].mxu1 }
 0x104   :  { %v688_v15 = vmax.f32 %v656_v6, %v672_v7  ;;  %v657_v16 = vmax.f32 %v972_v40, %v988_v13  ;;  %v673_v17 = vmax.f32 %v1004_v41, %v1020_v14  ;;  %v466_v18 = vpop.f32.mrb[19].mxu0  ;;  %v594_v19 = vpop.f32.mrb[19].mxu1 }
 0x105   :  { %v686_v20 = vmax.f32 %v654_v11, %v670_v12  ;;  %v655_v21 = vmax.f32 %v402_v42, %v466_v18  ;;  %v671_v22 = vmax.f32 %v530_v43, %v594_v19 }
 0x106   :  { %v711_v23 = vadd.f32 %v1374_v10, %v688_v15  ;;  %v689_v24 = vmax.f32 %v657_v16, %v673_v17 }
 0x107   :  { %v709_v25 = vadd.f32 %v1374_v10, %v686_v20  ;;  %v687_v26 = vmax.f32 %v655_v21, %v671_v22 }
 0x108   :  { %v727_v27 = vmax.f32 %v711_v23, 0.0  ;;  %v712_v28 = vadd.f32 %v1374_v10, %v689_v24 }
 0x109   :  { %v725_v29 = vmax.f32 %v709_v25, 0.0  ;;  %v710_v30 = vadd.f32 %v1374_v10, %v687_v26  ;;  %v991_v31 = vpop.f32.mrb[20].mxu0  ;;  %v1023_v32 = vpop.f32.mrb[20].mxu1 }
 0x10a   :  { %743 = vst [vmem:[#allocation2 + $0x10] sm:$0xff] %v727_v27  ;;  %v728_v33 = vmax.f32 %v712_v28, 0.0  ;;  %v660_v34 = vmax.f32 %v1323_v44, %v991_v31  ;;  %v676_v35 = vmax.f32 %v1325_v45, %v1023_v32  ;;  %v479_v36 = vpop.f32.mrb[21].mxu0  ;;  %v607_v37 = vpop.f32.mrb[21].mxu1  ;;  %v781_v13 = vmul.f32 %v727_v27, %v727_v27 }
 0x10b   :  { %741 = vst [vmem:[#allocation2] sm:$0xff] %v725_v29  ;;  %v726_v38 = vmax.f32 %v710_v30, 0.0  ;;  %v658_v39 = vmax.f32 %v1327_v46, %v479_v36  ;;  %v674_v40 = vmax.f32 %v1329_v47, %v607_v37  ;;  %v992_v41 = vpop.f32.mrb[22].mxu0  ;;  %v1024_v42 = vpop.f32.mrb[22].mxu1  ;;  %v779_v43 = vmul.f32 %v725_v29, %v725_v29 }
 0x10c   :  { %744 = vst [vmem:[#allocation2 + $0x18] sm:$0xff] %v728_v33  ;;  %v692_v4 = vmax.f32 %v660_v34, %v676_v35  ;;  %v661_v5 = vmax.f32 %v1331_v48, %v992_v41  ;;  %v677_v6 = vmax.f32 %v1333_v49, %v1024_v42  ;;  %v482_v44 = vpop.f32.mrb[23].mxu0  ;;  %v610_v7 = vpop.f32.mrb[23].mxu1  ;;  %v782_v18 = vmul.f32 %v728_v33, %v728_v33 }
 0x10d   :  { %742 = vst [vmem:[#allocation2 + $0x8] sm:$0xff] %v726_v38  ;;  %v757_v45 = vadd.f32 %v726_v38, %v725_v29  ;;  %v780_v8 = vmul.f32 %v726_v38, %v726_v38  ;;  %v690_v9 = vmax.f32 %v658_v39, %v674_v40  ;;  %v659_v11 = vmax.f32 %v1335_v50, %v482_v44 }
 0x10e   :  { %v715_v46 = vadd.f32 %v1374_v10, %v692_v4  ;;  %v693_v47 = vmax.f32 %v661_v5, %v677_v6  ;;  %v675_v12 = vmax.f32 %v1337_v51, %v610_v7 }
 0x10f   :  { %v758_v14 = vadd.f32 %v757_v45, %v727_v27  ;;  %v795_v15 = vadd.f32 %v780_v8, %v779_v43  ;;  %v713_v48 = vadd.f32 %v1374_v10, %v690_v9 }
 0x110   :  { %v731_v16 = vmax.f32 %v715_v46, 0.0  ;;  %v716_v49 = vadd.f32 %v1374_v10, %v693_v47  ;;  %v691_v17 = vmax.f32 %v659_v11, %v675_v12 }
 0x111   :  { %v796_v19 = vadd.f32 %v795_v15, %v781_v13  ;;  %v729_v20 = vmax.f32 %v713_v48, 0.0  ;;  %v759_v21 = vadd.f32 %v758_v14, %v728_v33  ;;  %v995_v22 = vpop.f32.mrb[24].mxu0  ;;  %v1027_v50 = vpop.f32.mrb[24].mxu1 }
 0x112   :  { %747 = vst [vmem:[#allocation2 + $0x30] sm:$0xff] %v731_v16  ;;  %v732_v23 = vmax.f32 %v716_v49, 0.0  ;;  %v714_v24 = vadd.f32 %v1374_v10, %v691_v17  ;;  %v664_v51 = vmax.f32 %v1339_v52, %v995_v22  ;;  %v495_v25 = vpop.f32.mrb[25].mxu0  ;;  %v623_v26 = vpop.f32.mrb[25].mxu1  ;;  %v680_v30 = vmax.f32 %v1341_v53, %v1027_v50 }
 0x113   :  { %745 = vst [vmem:[#allocation2 + $0x20] sm:$0xff] %v729_v20  ;;  %v760_v27 = vadd.f32 %v759_v21, %v729_v20  ;;  %v783_v28 = vmul.f32 %v729_v20, %v729_v20  ;;  %v797_v29 = vadd.f32 %v796_v19, %v782_v18  ;;  %v996_v31 = vpop.f32.mrb[26].mxu0  ;;  %v1028_v32 = vpop.f32.mrb[26].mxu1  ;;  %v662_v34 = vmax.f32 %v1343_v54, %v495_v25 }
 0x114   :  { %748 = vst [vmem:[#allocation2 + $0x38] sm:$0xff] %v732_v23  ;;  %v730_v33 = vmax.f32 %v714_v24, 0.0  ;;  %v678_v35 = vmax.f32 %v1345_v55, %v623_v26  ;;  %v498_v36 = vpop.f32.mrb[27].mxu0  ;;  %v626_v37 = vpop.f32.mrb[27].mxu1  ;;  %v696_v52 = vmax.f32 %v664_v51, %v680_v30  ;;  %v665_v39 = vmax.f32 %v1347_v56, %v996_v31 }
 0x115   :  { %v798_v38 = vadd.f32 %v797_v29, %v783_v28  ;;  %v681_v40 = vmax.f32 %v1349_v57, %v1028_v32  ;;  %v663_v43 = vmax.f32 %v1351_v58, %v498_v36  ;;  %v679_v54 = vmax.f32 %v1353_v59, %v626_v37 }
 0x116   :  { %746 = vst [vmem:[#allocation2 + $0x28] sm:$0xff] %v730_v33  ;;  %v761_v41 = vadd.f32 %v760_v27, %v730_v33  ;;  %v784_v42 = vmul.f32 %v730_v33, %v730_v33  ;;  %v694_v53 = vmax.f32 %v662_v34, %v678_v35  ;;  %v719_v4 = vadd.f32 %v1374_v10, %v696_v52 }
 0x117   :  { %v697_v5 = vmax.f32 %v665_v39, %v681_v40  ;;  %v785_v55 = vmul.f32 %v731_v16, %v731_v16  ;;  %v786_v45 = vmul.f32 %v732_v23, %v732_v23  ;;  %v695_v8 = vmax.f32 %v663_v43, %v679_v54 }
 0x118   :  { %v762_v6 = vadd.f32 %v761_v41, %v731_v16  ;;  %v799_v44 = vadd.f32 %v798_v38, %v784_v42  ;;  %v717_v7 = vadd.f32 %v1374_v10, %v694_v53  ;;  %v735_v56 = vmax.f32 %v719_v4, 0.0 }
 0x119   :  { %v720_v57 = vadd.f32 %v1374_v10, %v697_v5  ;;  %v999_v9 = vpop.f32.mrb[28].mxu0  ;;  %v1031_v11 = vpop.f32.mrb[28].mxu1  ;;  %v718_v15 = vadd.f32 %v1374_v10, %v695_v8 }
 0x11a   :  { %v800_v46 = vadd.f32 %v799_v44, %v785_v55  ;;  %v733_v47 = vmax.f32 %v717_v7, 0.0  ;;  %v763_v58 = vadd.f32 %v762_v6, %v732_v23  ;;  %v668_v12 = vmax.f32 %v1355_v60, %v999_v9  ;;  %v511_v13 = vpop.f32.mrb[29].mxu0  ;;  %v639_v14 = vpop.f32.mrb[29].mxu1  ;;  %751 = vst [vmem:[#allocation2 + $0x50] sm:$0xff] %v735_v56 }
 0x11b   :  { %v736_v59 = vmax.f32 %v720_v57, 0.0  ;;  %v684_v48 = vmax.f32 %v1357_v61, %v1031_v11  ;;  %v1000_v16 = vpop.f32.mrb[30].mxu0  ;;  %v1032_v49 = vpop.f32.mrb[30].mxu1  ;;  %v666_v20 = vmax.f32 %v1359_v62, %v511_v13  ;;  %v734_v60 = vmax.f32 %v718_v15, 0.0 }
 0x11c   :  { %749 = vst [vmem:[#allocation2 + $0x40] sm:$0xff] %v733_v47  ;;  %v764_v17 = vadd.f32 %v763_v58, %v733_v47  ;;  %v787_v18 = vmul.f32 %v733_v47, %v733_v47  ;;  %v801_v19 = vadd.f32 %v800_v46, %v786_v45  ;;  %v514_v21 = vpop.f32.mrb[31].mxu0  ;;  %v642_v22 = vpop.f32.mrb[31].mxu1  ;;  %v682_v23 = vmax.f32 %v1361_v63, %v639_v14 }
 0x11d   :  { %752 = vst [vmem:[#allocation2 + $0x58] sm:$0xff] %v736_v59  ;;  %v700_v50 = vmax.f32 %v668_v12, %v684_v48  ;;  %v669_v51 = vmax.f32 %v1363_v0, %v1000_v16  ;;  %v685_v61 = vmax.f32 %v1365_v1, %v1032_v49  ;;  %v667_v25 = vmax.f32 %v1367_v2, %v514_v21 }
 0x11e   :  { %v802_v24 = vadd.f32 %v801_v19, %v787_v18  ;;  %750 = vst [vmem:[#allocation2 + $0x48] sm:$0xff] %v734_v60  ;;  %v765_v26 = vadd.f32 %v764_v17, %v734_v60  ;;  %v788_v27 = vmul.f32 %v734_v60, %v734_v60  ;;  %v698_v62 = vmax.f32 %v666_v20, %v682_v23 }
 0x11f   :  { %v723_v28 = vadd.f32 %v1374_v10, %v700_v50  ;;  %v789_v29 = vmul.f32 %v735_v56, %v735_v56  ;;  %v701_v30 = vmax.f32 %v669_v51, %v685_v61  ;;  %v683_v31 = vmax.f32 %v1369_v3, %v642_v22 }
 0x120   :  { %v766_v32 = vadd.f32 %v765_v26, %v735_v56  ;;  %v803_v33 = vadd.f32 %v802_v24, %v788_v27  ;;  %v721_v34 = vadd.f32 %v1374_v10, %v698_v62  ;;  %v790_v2 = vmul.f32 %v736_v59, %v736_v59 }
 0x121   :  { %v739_v63 = vmax.f32 %v723_v28, 0.0  ;;  %v724_v0 = vadd.f32 %v1374_v10, %v701_v30  ;;  %v699_v1 = vmax.f32 %v667_v25, %v683_v31 }
 0x122   :  { %v804_v35 = vadd.f32 %v803_v33, %v789_v29  ;;  %v737_v36 = vmax.f32 %v721_v34, 0.0  ;;  %v767_v37 = vadd.f32 %v766_v32, %v736_v59 }
 0x123   :  { %755 = vst [vmem:[#allocation2 + $0x70] sm:$0xff] %v739_v63  ;;  %v740_v38 = vmax.f32 %v724_v0, 0.0  ;;  %v722_v52 = vadd.f32 %v1374_v10, %v699_v1 }
 0x124   :  { %753 = vst [vmem:[#allocation2 + $0x60] sm:$0xff] %v737_v36  ;;  %v768_v3 = vadd.f32 %v767_v37, %v737_v36  ;;  %v791_v39 = vmul.f32 %v737_v36, %v737_v36  ;;  %v805_v40 = vadd.f32 %v804_v35, %v790_v2 }
 0x125   :  { %756 = vst [vmem:[#allocation2 + $0x78] sm:$0xff] %v740_v38  ;;  %v738_v41 = vmax.f32 %v722_v52, 0.0 }
 0x126   :  { %v806_v42 = vadd.f32 %v805_v40, %v791_v39 }
 0x127   :  { %754 = vst [vmem:[#allocation2 + $0x68] sm:$0xff] %v738_v41  ;;  %v769_v53 = vadd.f32 %v768_v3, %v738_v41  ;;  %v792_v43 = vmul.f32 %v738_v41, %v738_v41 }
 0x128   :  { %1092 = shalt.err (!%p1089_p4)
}
 0x129   :  { %s1093_s15 = scalar_lea.hbm %s1463_s3, 2048 }
 0x12a   :  { %p1094_p5 = scmp.ne.s32.totalorder %s1463_s3, %s1093_s15  ;;  %p1097_p6 = scmp.lt.u32.totalorder %s1093_s15, %s1463_s3 }
 0x12c   :  { %p1099_p7 = pnand %p1097_p6, %p1094_p5 }
 0x12e   :  { %1102 = shalt.err (!%p1099_p7)
}
 0x12f   :  { %s1152_s20 = smov 128   ;;  %s1153_s21 = smov 8   ;;  %v793_v10 = vmul.f32 %v739_v63, %v739_v63  ;;  %v807_v4 = vadd.f32 %v806_v42, %v792_v43  ;;  %v770_v5 = vadd.f32 %v769_v53, %v739_v63  ;;  %v794_v54 = vmul.f32 %v740_v38, %v740_v38 }
 0x130   :  { %828 = dma.vmem_to_hbm [thread:$0]  %s823_s11, 2048, %s1463_s3, [#allocation3], %s1152_s20, %s1152_s20, %s1153_s21  }
 0x131   :  { %v771_v55 = vadd.f32 %v770_v5, %v740_v38  ;;  %v808_v6 = vadd.f32 %v807_v4, %v793_v10  ;;  %s1154_s24 = smov [#allocation4]   ;;  %s1155_s26 = smov [#allocation6]  }
 0x132   :  { %s835_s25 = sshll.u32 %s1154_s24, 4  ;;  %s845_s3 = sshll.u32 %s1155_s26, 4  ;;  %s836_s25 = int_to_ptr.vmem [resolvable:$true] %s835_s25  ;;  %s1428_s3 = int_to_ptr.vmem [resolvable:$true] %s845_s3 }
 0x133   :  { %v772_v44 = vrot.slane %v771_v55, 4  ;;  %v809_v7 = vadd.f32 %v808_v6, %v794_v54  ;;  %s1103_s27 = scalar_lea.vmem %s836_s25, 16  ;;  %s1107_s1 = scalar_lea.vmem %s836_s25, 32 }
 0x134   :  { %p1104_p8 = scmp.ne.s32.totalorder %s836_s25, %s1103_s27  ;;  %p1108_p9 = scmp.lt.s32.totalorder %s836_s25, %s836_s25 }
 0x135   :  { %v773_v45 = vadd.f32 %v772_v44, %v771_v55  ;;  %v810_v56 = vrot.slane %v809_v7, 4  ;;  %p1109_p10 = scmp.lt.s32.totalorder %s1107_s1, %s1103_s27 }
 0x137   :  { %v774_v57 = vrot.slane %v773_v45, 2  ;;  %v811_v8 = vadd.f32 %v810_v56, %v809_v7  ;;  %p1110_p11 = por %p1109_p10, %p1108_p9 }
 0x139   :  { %v775_v9 = vadd.f32 %v774_v57, %v773_v45  ;;  %v812_v11 = vrot.slane %v811_v8, 2  ;;  %p1111_p12 = pnand %p1110_p11, %p1104_p8 }
 0x13b   :  { %v776_v46 = vrot.slane %v775_v9, 1  ;;  %v813_v47 = vadd.f32 %v812_v11, %v811_v8 }
 0x13d   :  { %v777_v58 = vadd.f32 %v776_v46, %v775_v9  ;;  %v814_v12 = vrot.slane %v813_v47, 1 }
 0x13f   :  { %778 = vst [vmem:[#allocation4] sm:$0x1] %v777_v58  ;;  %v815_v13 = vadd.f32 %v814_v12, %v813_v47 }
 0x140   :  { %1114 = shalt.err (!%p1111_p12)
}
 0x141   :  { %s1115_s30 = scalar_lea.hbm %s1464_s4, 16 }
 0x142   :  { %p1116_p13 = scmp.ne.s32.totalorder %s1464_s4, %s1115_s30  ;;  %p1119_p0 = scmp.lt.u32.totalorder %s1115_s30, %s1464_s4 }
 0x144   :  { %p1121_p1 = pnand %p1119_p0, %p1116_p13 }
 0x146   :  { %1124 = shalt.err (!%p1121_p1)
}
 0x147   :  { %838 = dma.vmem_to_hbm [thread:$0]  %s836_s25, 16, %s1464_s4, [#allocation5]   ;;  %816 = vst [vmem:[#allocation6] sm:$0x1] %v815_v13 }
 0x148   :  { %s1125_s2 = scalar_lea.vmem %s1428_s3, 16  ;;  %s1129_s11 = scalar_lea.vmem %s1428_s3, 32 }
 0x149   :  { %p1126_p2 = scmp.ne.s32.totalorder %s1428_s3, %s1125_s2  ;;  %p1130_p3 = scmp.lt.s32.totalorder %s1428_s3, %s1428_s3 }
 0x14a   :  { %p1131_p4 = scmp.lt.s32.totalorder %s1129_s11, %s1125_s2 }
 0x14c   :  { %p1132_p5 = por %p1131_p4, %p1130_p3 }
 0x14e   :  { %p1133_p6 = pnand %p1132_p5, %p1126_p2 }
 0x150   :  { %1136 = shalt.err (!%p1133_p6)
}
 0x151   :  { %s1137_s14 = scalar_lea.hbm %s1465_s5, 16 }
 0x152   :  { %p1138_p7 = scmp.ne.s32.totalorder %s1465_s5, %s1137_s14  ;;  %p1141_p8 = scmp.lt.u32.totalorder %s1137_s14, %s1465_s5 }
 0x154   :  { %p1143_p9 = pnand %p1141_p8, %p1138_p7 }
 0x156   :  { %1146 = shalt.err (!%p1143_p9)
}
 0x157   :  { %848 = dma.vmem_to_hbm [thread:$0]  %s1428_s3, 16, %s1465_s5, [#allocation5]  }
 0x158   :  { %1147 = dma.done.wait [#allocation3], 2048  }
 0x159   :  { %1148 = vsyncadd [#allocation3], 4294965248 }
 0x15a   :  { %1149 = dma.done.wait [#allocation5], 32  }
 0x15b   :  { %1150 = vsyncadd [#allocation5], 4294967264 }
 0x15c   :  { %858 = vsyncpa [#allocation3], 1 }
 0x15d   :  { %859 = vsyncpa [#allocation5], 1 }

</bundles_post_ra>
